<compile_context>
chip_gen: v7x
topology: tpu7x:2x2x1
jax: 0.10.0
libtpu: 0.0.40
codegen_flags: <defaults>
</compile_context>

<pallas_src>
import math

import numpy as np
import jax
import jax.numpy as jnp
from jax import lax
from jax.experimental import pallas as pl
from jax.experimental.pallas import tpu as pltpu  # noqa: F401

# ----------------------------- config ---------------------------------------
B = 2         # batch
T = 16        # input time length
IDIM = 8      # input feature dim
ODIM = 16     # output feature dim
DROPOUT_RATE = 0.0  # TODO(synk): dropout is identity at inference; not applied in-kernel.

T1 = T - 2                    # after conv1 (k=3, stride=1) -> 14
T2 = (T1 - 3) // 2 + 1        # after conv2 (k=3, stride=2) -> 6
XSCALE = math.sqrt(ODIM)      # PositionalEncoding xscale

M1 = B * T                    # 32: flattened (batch-fused) input / conv1 rows
MX = M1 + 8                   # 40: padded input rows (need >= M1+2, keep 8-aligned)
M2 = B * T2                   # 12: valid output rows
M2P = 16                      # padded output rows / per-tap selector block (8-aligned)
P_LANES = 128                 # packed-constant buffer lane width

# Packed-constant buffer layout (rows; every block starts on an 8-row boundary).
R_W1 = 0                      # 3 conv1 tap weights (IDIM, ODIM) at R_W1 + 8*k
R_B1 = R_W1 + 3 * 8           # 24 : conv1 bias row (1, ODIM)
R_S2 = R_B1 + 8               # 32 : stride-2 selector, 3 tap blocks of M2P rows, width M1
R_W2 = R_S2 + 3 * M2P         # 80 : 3 conv2 tap weights (ODIM, ODIM) at R_W2 + ODIM*k
R_B2 = R_W2 + 3 * ODIM        # 128: conv2 bias row (1, ODIM)
R_WL = R_B2 + 8               # 136: linear weight (xscale folded), (ODIM, ODIM)
R_PE = R_WL + ODIM            # 152: PE table + scaled linear bias, (M2P, ODIM)
P_ROWS = R_PE + M2P           # 168


# ----------------------------- host-side helpers ------------------------------
def sinusoidal_pe(length, d_model):
    """espnet PositionalEncoding table pe[:length, :d_model] (numpy, constant)."""
    position = np.arange(length, dtype=np.float32)[:, None]
    div_term = np.exp(
        np.arange(0, d_model, 2, dtype=np.float32) * -(math.log(10000.0) / d_model)
    )
    pe = np.zeros((length, d_model), np.float32)
    pe[:, 0::2] = np.sin(position * div_term)
    pe[:, 1::2] = np.cos(position * div_term)
    return pe


def build_packed_params(w1_pt, b1, w2_pt, b2, wl_pt, bl, pe):
    """Pack all constants into one sublane-stacked (P_ROWS, 128) f32 buffer (one DMA)."""
    w1_pt, b1, w2_pt, b2, wl_pt, bl, pe = map(
        np.asarray, (w1_pt, b1, w2_pt, b2, wl_pt, bl, pe))
    buf = np.zeros((P_ROWS, P_LANES), np.float32)
    for k in range(3):
        # conv taps fused per-tap (tap-sum form): W_k = w_pt[:, :, k].T
        buf[R_W1 + 8 * k: R_W1 + 8 * k + IDIM, :ODIM] = w1_pt[:, :, k].T
        buf[R_W2 + ODIM * k: R_W2 + ODIM * (k + 1), :ODIM] = w2_pt[:, :, k].T
        # stride-2 tap selector: output row b*T2+t of tap k picks conv1 row b*T + 2t + k
        for b in range(B):
            for t in range(T2):
                buf[R_S2 + M2P * k + b * T2 + t, b * T + 2 * t + k] = 1.0
    buf[R_B1, :ODIM] = b1
    buf[R_B2, :ODIM] = b2
    buf[R_WL: R_WL + ODIM, :ODIM] = wl_pt.T * XSCALE            # xscale folded into weight
    peb = pe[:T2] + bl[None, :] * XSCALE                         # scaled bias folded into PE
    buf[R_PE: R_PE + M2, :ODIM] = np.tile(peb, (B, 1))           # rows M2..M2P-1 stay zero
    return jnp.asarray(buf)


# ----------------------------- kernel -----------------------------------------
def subsampling_kernel(x_ref, p_ref, o_ref):
    """Batch-fused conv1(s=1)+ReLU -> conv2(s=2)+ReLU -> Linear + PE, one invocation."""
    f32 = jnp.float32

    def pblk(row, nrows, ncols):
        # static slice of the packed constant buffer (free view + small load)
        return p_ref[pl.ds(row, nrows), pl.ds(0, ncols)]

    # ---- Conv1d(idim, odim, 3, stride=1) + ReLU: tap-sum over 3 shifted views ----
    # Rows of h1 follow the flattened (B*T) index; rows {T1..T-1} are batch-seam
    # garbage and rows {M1-2, M1-1} use the zero pad — never selected by S2.
    acc1 = jnp.dot(x_ref[pl.ds(0, M1), :], pblk(R_W1 + 0, IDIM, ODIM),
                   preferred_element_type=f32)
    acc1 += jnp.dot(x_ref[pl.ds(1, M1), :], pblk(R_W1 + 8, IDIM, ODIM),
                    preferred_element_type=f32)
    acc1 += jnp.dot(x_ref[pl.ds(2, M1), :], pblk(R_W1 + 16, IDIM, ODIM),
                    preferred_element_type=f32)
    h1 = jnp.maximum(acc1 + pblk(R_B1, 1, ODIM), 0.0)                    # (M1, ODIM)

    # ---- Conv1d(odim, odim, 3, stride=2) + ReLU ----
    # One constant selector matmul gathers all three stride-2 taps for both batches;
    # tap blocks are 16-row (8-aligned) so the slices below are free views.
    taps = jnp.dot(pblk(R_S2, 3 * M2P, M1), h1, preferred_element_type=f32)   # (48, ODIM)
    acc2 = jnp.dot(taps[0 * M2P:1 * M2P], pblk(R_W2 + 0 * ODIM, ODIM, ODIM),
                   preferred_element_type=f32)
    acc2 += jnp.dot(taps[1 * M2P:2 * M2P], pblk(R_W2 + 1 * ODIM, ODIM, ODIM),
                    preferred_element_type=f32)
    acc2 += jnp.dot(taps[2 * M2P:3 * M2P], pblk(R_W2 + 2 * ODIM, ODIM, ODIM),
                    preferred_element_type=f32)
    h2 = jnp.maximum(acc2 + pblk(R_B2, 1, ODIM), 0.0)        # (M2P, ODIM); rows >= M2 garbage

    # ---- Linear(odim, odim) (xscale folded) + PositionalEncoding (bias folded) ----
    y = jnp.dot(h2, pblk(R_WL, ODIM, ODIM), preferred_element_type=f32) + pblk(R_PE, M2P, ODIM)
    o_ref[...] = y.astype(o_ref.dtype)                        # single (M2P, ODIM) store


# ----------------------------- wrapper -----------------------------------------
@jax.jit
def conv1d_subsampling2(x, x_mask, packed_params):
    """x: (B, T, IDIM) f32, x_mask: (B, 1, T) bool -> ((B, T2, ODIM), (B, 1, T2))."""
    x2d = jnp.pad(x.reshape(B * T, IDIM), ((0, MX - B * T), (0, 0)))   # (MX, IDIM)
    y = pl.pallas_call(
        subsampling_kernel,
        out_shape=jax.ShapeDtypeStruct((M2P, ODIM), jnp.float32),
    )(x2d, packed_params)
    out = y[:M2].reshape(B, T2, ODIM)
    if x_mask is None:
        return out, None
    # x_mask[:, :, :-2:1][:, :, :-2:2]
    return out, x_mask[:, :, :-2][:, :, :-2:2]


# ----------------------------- reference (pure JAX) ---------------------------
def reference_forward(x, x_mask, w1_pt, b1, w2_pt, b2, wl_pt, bl, pe):
    xc = jnp.transpose(x, (0, 2, 1))  # (B, IDIM, T)
    h = lax.conv_general_dilated(xc, w1_pt, (1,), "VALID",
                                 dimension_numbers=("NCH", "OIH", "NCH"))
    h = jnp.maximum(h + b1[None, :, None], 0.0)
    h = lax.conv_general_dilated(h, w2_pt, (2,), "VALID",
                                 dimension_numbers=("NCH", "OIH", "NCH"))
    h = jnp.maximum(h + b2[None, :, None], 0.0)
    h = jnp.transpose(h, (0, 2, 1))  # (B, T2, ODIM)
    y = h @ wl_pt.T + bl
    y = y * XSCALE + pe[None, : y.shape[1]]
    mask = None if x_mask is None else x_mask[:, :, :-2][:, :, :-2:2]
    return y, mask


# ----------------------------- main -------------------------------------------
if __name__ == "__main__":
    key = jax.random.PRNGKey(0)
    k_x, k_w1, k_b1, k_w2, k_b2, k_wl, k_bl = jax.random.split(key, 7)

    # Deterministic synthetic parameters (PyTorch-shaped).
    w1_pt = jax.random.normal(k_w1, (ODIM, IDIM, 3), jnp.float32) * 0.1   # Conv1d(idim, odim, 3)
    b1 = jax.random.normal(k_b1, (ODIM,), jnp.float32) * 0.1
    w2_pt = jax.random.normal(k_w2, (ODIM, ODIM, 3), jnp.float32) * 0.1   # Conv1d(odim, odim, 3, 2)
    b2 = jax.random.normal(k_b2, (ODIM,), jnp.float32) * 0.1
    wl_pt = jax.random.normal(k_wl, (ODIM, ODIM), jnp.float32) * 0.1      # Linear(odim, odim)
    bl = jax.random.normal(k_bl, (ODIM,), jnp.float32) * 0.1
    pe = jnp.asarray(sinusoidal_pe(T2, ODIM))

    packed = build_packed_params(w1_pt, b1, w2_pt, b2, wl_pt, bl, pe)

    x = jax.random.normal(k_x, (B, T, IDIM), jnp.float32)
    x_mask = jnp.ones((B, 1, T), dtype=bool)

    out, out_mask = conv1d_subsampling2(x, x_mask, packed)
    out = jax.block_until_ready(out)
    out_mask = jax.block_until_ready(out_mask)

    ref_out, ref_mask = reference_forward(x, x_mask, w1_pt, b1, w2_pt, b2, wl_pt, bl, pe)

    assert out.shape == (B, T2, ODIM), out.shape
    assert out_mask.shape == (B, 1, T2), out_mask.shape
    max_err = float(jnp.max(jnp.abs(out - ref_out)))
    assert jnp.allclose(out, ref_out, atol=1e-4, rtol=1e-4), max_err
    assert bool(jnp.all(out_mask == ref_mask))

    print("KERNEL_OK")
</pallas_src>

<mosaic_0001>
module attributes {stable_mosaic.version = 11 : i64} {
  func.func @subsampling_kernel(%arg0: memref<40x8xf32, #tpu.memory_space<vmem>>, %arg1: memref<168x128xf32, #tpu.memory_space<vmem>>, %arg2: memref<16x16xf32, #tpu.memory_space<vmem>>) attributes {dimension_semantics = [], scalar_prefetch = 0 : i64, scratch_operands = 0 : i64, tpu.core_type = #tpu.core_type<tc>} {
    %c0 = arith.constant 0 : index
    %c0_0 = arith.constant 0 : index
    %0 = vector.load %arg0[%c0, %c0_0] : memref<40x8xf32, #tpu.memory_space<vmem>>, vector<32x8xf32>
    %c0_1 = arith.constant 0 : index
    %c0_2 = arith.constant 0 : index
    %1 = vector.load %arg1[%c0_1, %c0_2] : memref<168x128xf32, #tpu.memory_space<vmem>>, vector<8x16xf32>
    %cst = arith.constant dense<0.000000e+00> : vector<32x16xf32>
    %2 = tpu.matmul %0, %1, %cst {dimension_numbers = #tpu.dot_dimension_numbers<[1], [0], [0], [1], [0, 0, 1, 1], [], []>} : vector<32x8xf32>, vector<8x16xf32>, vector<32x16xf32> -> vector<32x16xf32>
    %c1 = arith.constant 1 : index
    %c0_3 = arith.constant 0 : index
    %3 = vector.load %arg0[%c1, %c0_3] : memref<40x8xf32, #tpu.memory_space<vmem>>, vector<32x8xf32>
    %c8 = arith.constant 8 : index
    %c0_4 = arith.constant 0 : index
    %4 = vector.load %arg1[%c8, %c0_4] : memref<168x128xf32, #tpu.memory_space<vmem>>, vector<8x16xf32>
    %cst_5 = arith.constant dense<0.000000e+00> : vector<32x16xf32>
    %5 = tpu.matmul %3, %4, %cst_5 {dimension_numbers = #tpu.dot_dimension_numbers<[1], [0], [0], [1], [0, 0, 1, 1], [], []>} : vector<32x8xf32>, vector<8x16xf32>, vector<32x16xf32> -> vector<32x16xf32>
    %6 = arith.addf %2, %5 : vector<32x16xf32>
    %c2 = arith.constant 2 : index
    %c0_6 = arith.constant 0 : index
    %7 = vector.load %arg0[%c2, %c0_6] : memref<40x8xf32, #tpu.memory_space<vmem>>, vector<32x8xf32>
    %c16 = arith.constant 16 : index
    %c0_7 = arith.constant 0 : index
    %8 = vector.load %arg1[%c16, %c0_7] : memref<168x128xf32, #tpu.memory_space<vmem>>, vector<8x16xf32>
    %cst_8 = arith.constant dense<0.000000e+00> : vector<32x16xf32>
    %9 = tpu.matmul %7, %8, %cst_8 {dimension_numbers = #tpu.dot_dimension_numbers<[1], [0], [0], [1], [0, 0, 1, 1], [], []>} : vector<32x8xf32>, vector<8x16xf32>, vector<32x16xf32> -> vector<32x16xf32>
    %10 = arith.addf %6, %9 : vector<32x16xf32>
    %c24 = arith.constant 24 : index
    %c0_9 = arith.constant 0 : index
    %11 = vector.load %arg1[%c24, %c0_9] : memref<168x128xf32, #tpu.memory_space<vmem>>, vector<1x16xf32>
    %12 = vector.broadcast %11 : vector<1x16xf32> to vector<32x16xf32>
    %13 = arith.addf %10, %12 : vector<32x16xf32>
    %cst_10 = arith.constant 0.000000e+00 : f32
    %14 = vector.broadcast %cst_10 : f32 to vector<32x16xf32>
    %15 = arith.maximumf %13, %14 : vector<32x16xf32>
    %c32 = arith.constant 32 : index
    %c0_11 = arith.constant 0 : index
    %16 = vector.load %arg1[%c32, %c0_11] : memref<168x128xf32, #tpu.memory_space<vmem>>, vector<48x32xf32>
    %cst_12 = arith.constant dense<0.000000e+00> : vector<48x16xf32>
    %17 = tpu.matmul %16, %15, %cst_12 {dimension_numbers = #tpu.dot_dimension_numbers<[1], [0], [0], [1], [0, 0, 1, 1], [], []>} : vector<48x32xf32>, vector<32x16xf32>, vector<48x16xf32> -> vector<48x16xf32>
    %18 = vector.extract_strided_slice %17 {offsets = [0, 0], sizes = [16, 16], strides = [1, 1]} : vector<48x16xf32> to vector<16x16xf32>
    %c80 = arith.constant 80 : index
    %c0_13 = arith.constant 0 : index
    %19 = vector.load %arg1[%c80, %c0_13] : memref<168x128xf32, #tpu.memory_space<vmem>>, vector<16x16xf32>
    %cst_14 = arith.constant dense<0.000000e+00> : vector<16x16xf32>
    %20 = tpu.matmul %18, %19, %cst_14 {dimension_numbers = #tpu.dot_dimension_numbers<[1], [0], [0], [1], [0, 0, 1, 1], [], []>} : vector<16x16xf32>, vector<16x16xf32>, vector<16x16xf32> -> vector<16x16xf32>
    %21 = vector.extract_strided_slice %17 {offsets = [16, 0], sizes = [16, 16], strides = [1, 1]} : vector<48x16xf32> to vector<16x16xf32>
    %c96 = arith.constant 96 : index
    %c0_15 = arith.constant 0 : index
    %22 = vector.load %arg1[%c96, %c0_15] : memref<168x128xf32, #tpu.memory_space<vmem>>, vector<16x16xf32>
    %cst_16 = arith.constant dense<0.000000e+00> : vector<16x16xf32>
    %23 = tpu.matmul %21, %22, %cst_16 {dimension_numbers = #tpu.dot_dimension_numbers<[1], [0], [0], [1], [0, 0, 1, 1], [], []>} : vector<16x16xf32>, vector<16x16xf32>, vector<16x16xf32> -> vector<16x16xf32>
    %24 = arith.addf %20, %23 : vector<16x16xf32>
    %25 = vector.extract_strided_slice %17 {offsets = [32, 0], sizes = [16, 16], strides = [1, 1]} : vector<48x16xf32> to vector<16x16xf32>
    %c112 = arith.constant 112 : index
    %c0_17 = arith.constant 0 : index
    %26 = vector.load %arg1[%c112, %c0_17] : memref<168x128xf32, #tpu.memory_space<vmem>>, vector<16x16xf32>
    %cst_18 = arith.constant dense<0.000000e+00> : vector<16x16xf32>
    %27 = tpu.matmul %25, %26, %cst_18 {dimension_numbers = #tpu.dot_dimension_numbers<[1], [0], [0], [1], [0, 0, 1, 1], [], []>} : vector<16x16xf32>, vector<16x16xf32>, vector<16x16xf32> -> vector<16x16xf32>
    %28 = arith.addf %24, %27 : vector<16x16xf32>
    %c128 = arith.constant 128 : index
    %c0_19 = arith.constant 0 : index
    %29 = vector.load %arg1[%c128, %c0_19] : memref<168x128xf32, #tpu.memory_space<vmem>>, vector<1x16xf32>
    %30 = vector.broadcast %29 : vector<1x16xf32> to vector<16x16xf32>
    %31 = arith.addf %28, %30 : vector<16x16xf32>
    %cst_20 = arith.constant 0.000000e+00 : f32
    %32 = vector.broadcast %cst_20 : f32 to vector<16x16xf32>
    %33 = arith.maximumf %31, %32 : vector<16x16xf32>
    %c136 = arith.constant 136 : index
    %c0_21 = arith.constant 0 : index
    %34 = vector.load %arg1[%c136, %c0_21] : memref<168x128xf32, #tpu.memory_space<vmem>>, vector<16x16xf32>
    %cst_22 = arith.constant dense<0.000000e+00> : vector<16x16xf32>
    %35 = tpu.matmul %33, %34, %cst_22 {dimension_numbers = #tpu.dot_dimension_numbers<[1], [0], [0], [1], [0, 0, 1, 1], [], []>} : vector<16x16xf32>, vector<16x16xf32>, vector<16x16xf32> -> vector<16x16xf32>
    %c152 = arith.constant 152 : index
    %c0_23 = arith.constant 0 : index
    %36 = vector.load %arg1[%c152, %c0_23] : memref<168x128xf32, #tpu.memory_space<vmem>>, vector<16x16xf32>
    %37 = arith.addf %35, %36 : vector<16x16xf32>
    %c0_24 = arith.constant 0 : index
    %c0_25 = arith.constant 0 : index
    %38 = vector.load %arg2[%c0_24, %c0_25] : memref<16x16xf32, #tpu.memory_space<vmem>>, vector<16x16xf32>
    tpu.vector_store %arg2[%c0_24, %c0_25], %37 {strides = array<i32>} : memref<16x16xf32, #tpu.memory_space<vmem>>, vector<16x16xf32>,
    return
  }
}

</mosaic_0001>

<bundles_post_ra>
// kernel: conv1d_subsampling2.1
= control target key start
LH: loop header
LB: loop body
LE: loop exit
PB: predicated region body
PF: predicated region fallthrough
CT: control target
= control target key end

     0   :  { %7 = vsyncpa [#allocation3], 0  ;;  %s1023_s9 = smov [#allocation2]   ;;  %s1123_s0 = inlined_call_operand.vmem [shape: f32[40,8], index: 0, kind: input, shape index: {}]   ;;  %s1124_s1 = inlined_call_operand.hbm [shape: f32[168,128], index: 1, kind: input, shape index: {}]   ;;  %s1125_s2 = inlined_call_operand.vmem [shape: f32[16,16], index: 2, kind: output, shape index: {}]  }
   0x1   :  { %s15_s10 = sshll.u32 %s1023_s9, 4  ;;  %s999_s13 = scalar_lea.hbm %s1124_s1, 2688  ;;  %s16_s10 = int_to_ptr.vmem [resolvable:$true] %s15_s10 }
   0x2   :  { %p1000_p0 = scmp.ne.s32.totalorder %s1124_s1, %s999_s13  ;;  %p1003_p1 = scmp.lt.u32.totalorder %s999_s13, %s1124_s1 }
   0x4   :  { %p1005_p2 = pnand %p1003_p1, %p1000_p0 }
   0x6   :  { %1008 = shalt.err (!%p1005_p2)
}
   0x7   :  { %s1009_s18 = scalar_lea.vmem %s16_s10, 2688  ;;  %p1014_p4 = scmp.lt.s32.totalorder %s16_s10, %s16_s10 }
   0x8   :  { %p1010_p3 = scmp.ne.s32.totalorder %s16_s10, %s1009_s18  ;;  %p1015_p5 = scmp.lt.s32.totalorder %s1009_s18, %s1009_s18 }
   0xa   :  { %p1016_p6 = por %p1015_p5, %p1014_p4 }
   0xc   :  { %p1017_p7 = pnand %p1016_p6, %p1010_p3 }
   0xe   :  { %1020 = shalt.err (!%p1017_p7)
}
   0xf   :  { %s1024_s19 = smov 128   ;;  %s1025_s20 = smov 8  }
  0x10   :  { %21 = dma.hbm_to_vmem [thread:$0]  %s1124_s1, 2688, %s16_s10, [#allocation3], %s1024_s19, %s1024_s19, %s1025_s20  }
  0x11   :  { %1021 = dma.done.wait [#allocation3], 2688  }
  0x12   :  { %1022 = vsyncadd [#allocation3], 4294964608  ;;  %vm35_vm0 = vcmask 64512   ;;  %v34_v0 = vld [vmem:[#allocation2 + $0x8] sm:$0xff]  ;;  %v29_v3 = vld [vmem:[#allocation2] sm:$0xff]  ;;  %vm355_vm1 = vcmask 261120  }
  0x13   :  { %v30_v1 = vld [vmem:[%s1123_s0 + $0x1] sm:$0xff]  ;;  %v31_v2 = vld [vmem:[%s1123_s0 + $0x9] sm:$0xff]  ;;  %891 = vmatprep.subr.mxu0 %v34_v0  ;;  %v32_v4 = vld [vmem:[%s1123_s0 + $0x11] sm:$0xff]  ;;  %vm473_vm2 = vcmask 130048  }
  0x14   :  { %893 = vmatprep.mubr.msk.f32.mxu0 %vm35_vm0, %v30_v1  ;;  %892 = vmatpush3.msra.mxu0 %v34_v0  ;;  %v234_v5 = vld [vmem:[#allocation2 + $0x10] sm:$0xff]  ;;  %v33_v6 = vld [vmem:[%s1123_s0 + $0x19] sm:$0xff]  ;;  %v26_v8 = vld [vmem:[%s1123_s0 + $0x8] sm:$0xff] }
  0x15   :  { %894 = vmatmul.mubr.msk.f32.vlgmr.msra.gmra.mrb[0].mxu0 %vm35_vm0, %v31_v2  ;;  %899 = vmatprep.subr.mxu0 %v29_v3  ;;  %v25_v7 = vld [vmem:[%s1123_s0] sm:$0xff]  ;;  %v27_v9 = vld [vmem:[%s1123_s0 + $0x10] sm:$0xff]  ;;  %v28_v10 = vld [vmem:[%s1123_s0 + $0x18] sm:$0xff] }
  0x16   :  { %900 = vmatpush3.msra.mxu0 %v29_v3  ;;  %896 = vmatprep.mubr.msk.f32.mxu0 %vm35_vm0, %v32_v4  ;;  %v230_v11 = vld [vmem:[%s1123_s0 + $0x2] sm:$0xff]  ;;  %v231_v12 = vld [vmem:[%s1123_s0 + $0xa] sm:$0xff]  ;;  %v232_v13 = vld [vmem:[%s1123_s0 + $0x12] sm:$0xff] }
  0x17   :  { %907 = vmatprep.subr.mxu0 %v234_v5  ;;  %v233_v14 = vld [vmem:[%s1123_s0 + $0x1a] sm:$0xff]  ;;  %v834_v16 = vld [vmem:[#allocation2 + $0x18] ss:$0 sm:$0xff]  ;;  %v472_v30 = vld [vmem:[#allocation2 + $0x68] sm:$0xff] }
  0x18   :  { %v349_v15 = vld [vmem:[#allocation2 + $0x20] sm:$0xff]  ;;  %v350_v34 = vld [vmem:[#allocation2 + $0x28] sm:$0xff]  ;;  %v351_v35 = vld [vmem:[#allocation2 + $0x30] sm:$0xff] }
  0x19   :  { %897 = vmatmul.mubr.msk.f32.gmra.mrb[2].mxu0 %vm35_vm0, %v33_v6  ;;  %923 = vmatprep.mubr.msk.f32.mxu1 %vm355_vm1, %v349_v15  ;;  %v471_v29 = vld [vmem:[#allocation2 + $0x60] sm:$0xff]  ;;  %v352_v36 = vld [vmem:[#allocation2 + $0x38] sm:$0xff]  ;;  %v354_v38 = vld [vmem:[#allocation2 + $0x48] sm:$0xff] }
  0x1a   :  { %901 = vmatprep.mubr.msk.f32.mxu0 %vm35_vm0, %v25_v7  ;;  %v968_v33 = vpack.c.bf16 %v472_v30, %v471_v29  ;;  %v353_v37 = vld [vmem:[#allocation2 + $0x40] sm:$0xff]  ;;  %v469_v39 = vld [vmem:[#allocation2 + $0x50] sm:$0xff]  ;;  %v470_v40 = vld [vmem:[#allocation2 + $0x58] sm:$0xff] }
  0x1b   :  { %v972_v41 = vpack.c.bf16 %v470_v40, %v469_v39  ;;  %v730_v42 = vld [vmem:[#allocation2 + $0x88] sm:$0xff]  ;;  %v731_v43 = vld [vmem:[#allocation2 + $0x90] sm:$0xff]  ;;  %v637_v48 = vld [vmem:[#allocation2 + $0x78] sm:$0xff] }
  0x1c   :  { %v980_v44 = vpack.c.bf16 %v731_v43, %v730_v42  ;;  %v636_v47 = vld [vmem:[#allocation2 + $0x70] sm:$0xff]  ;;  %v847_v54 = vld [vmem:[#allocation2 + $0x80] ss:$0 sm:$0xff]  ;;  %v732_v62 = vld [vmem:[#allocation2 + $0x98] sm:$0xff] }
  0x1d   :  { %902 = vmatmul.mubr.msk.f32.vlgmr.msra.gmra.mrb[0].mxu0 %vm35_vm0, %v26_v8  ;;  %v976_v51 = vpack.c.bf16 %v637_v48, %v636_v47  ;;  %v733_v61 = vld [vmem:[#allocation2 + $0xa0] sm:$0xff] }
  0x1e   :  { %908 = vmatpush3.msra.mxu0 %v234_v5  ;;  %904 = vmatprep.mubr.msk.f32.mxu0 %vm35_vm0, %v27_v9 }
  0x1f   :  { %981 = vmatprep.subr.bf16.mxu0 %v980_v44 }
  0x21   :  { %905 = vmatmul.mubr.msk.f32.gmra.mrb[2].mxu0 %vm35_vm0, %v28_v10 }
  0x22   :  { %909 = vmatprep.mubr.msk.f32.mxu0 %vm35_vm0, %v230_v11 }
  0x25   :  { %910 = vmatmul.mubr.msk.f32.vlgmr.msra.gmra.mrb[0].mxu0 %vm35_vm0, %v231_v12 }
  0x26   :  { %912 = vmatprep.mubr.msk.f32.mxu0 %vm35_vm0, %v232_v13  ;;  %983 = vmatpush3.bf16.msra.mxu0 %v980_v44 }
  0x29   :  { %913 = vmatmul.mubr.msk.f32.gmra.mrb[2].mxu0 %vm35_vm0, %v233_v14 }
  0xf8   :  { %v911_v17 = vpop.f32.mrb[0].mxu0 }
  0xf9   :  { %v342_v18 = vadd.f32 %v911_v17, %v834_v16  ;;  %v313_v19 = vpop.f32.mrb[1].mxu0 }
  0xfa   :  { %v341_v20 = vadd.f32 %v834_v16, %v313_v19 }
  0xfb   :  { %v346_v21 = vmax.f32 %v342_v18, 0.0 }
  0xfc   :  { %v345_v22 = vmax.f32 %v341_v20, 0.0  ;;  %v914_v23 = vpop.f32.mrb[2].mxu0 }
  0xfd   :  { %v344_v24 = vadd.f32 %v914_v23, %v834_v16  ;;  %v323_v25 = vpop.f32.mrb[3].mxu0 }
  0xfe   :  { %v343_v26 = vadd.f32 %v834_v16, %v323_v25  ;;  %v960_v27 = vpack.c.bf16 %v346_v21, %v345_v22 }
  0xff   :  { %v348_v28 = vmax.f32 %v344_v24, 0.0 }
 0x100   :  { %v347_v31 = vmax.f32 %v343_v26, 0.0  ;;  %961 = vmatprep.subr.bf16.mxu1 %v960_v27 }
 0x101   :  { %963 = vmatpush3.bf16.msra.mxu1 %v960_v27 }
 0x102   :  { %v964_v32 = vpack.c.bf16 %v348_v28, %v347_v31 }
 0x104   :  { %965 = vmatprep.subr.bf16.mxu1 %v964_v32 }
 0x105   :  { %967 = vmatpush3.bf16.msra.mxu1 %v964_v32 }
 0x106   :  { %969 = vmatprep.subr.bf16.mxu1 %v968_v33 }
 0x108   :  { %924 = vmatmul.mubr.msk.f32.vlgmr.msra.gmra.mrb[0].mxu1 %vm355_vm1, %v350_v34 }
 0x109   :  { %926 = vmatprep.mubr.msk.f32.mxu1 %vm355_vm1, %v351_v35  ;;  %971 = vmatpush3.bf16.msra.mxu1 %v968_v33 }
 0x10a   :  { %973 = vmatprep.subr.bf16.mxu1 %v972_v41 }
 0x10c   :  { %927 = vmatmul.mubr.msk.f32.gmra.mrb[2].mxu1 %vm355_vm1, %v352_v36 }
 0x10d   :  { %929 = vmatprep.mubr.msk.f32.mxu1 %vm355_vm1, %v353_v37 }
 0x110   :  { %930 = vmatmul.mubr.msk.f32.gmra.mrb[4].mxu1 %vm355_vm1, %v354_v38 }
 0x1db   :  { %v925_v45 = vpop.f32.mrb[0].mxu1 }
 0x1dc   :  { %v440_v46 = vpop.f32.mrb[1].mxu1 }
 0x1df   :  { %v928_v49 = vpop.f32.mrb[2].mxu1 }
 0x1e0   :  { %v450_v50 = vpop.f32.mrb[3].mxu1 }
 0x1e1   :  { %936 = vmatprep.mubr.msk.f32.mxu1 %vm473_vm2, %v450_v50 }
 0x1e2   :  { %937 = vmatmul.mubr.msk.f32.vlgmr.msra.gmra.mrb[6].mxu1 %vm473_vm2, %v928_v49 }
 0x1e3   :  { %975 = vmatpush3.bf16.msra.mxu1 %v972_v41  ;;  %943 = vmatprep.mubr.msk.f32.mxu1 %vm473_vm2, %v440_v46  ;;  %v931_v52 = vpop.f32.mrb[4].mxu1 }
 0x1e4   :  { %977 = vmatprep.subr.bf16.mxu1 %v976_v51  ;;  %v460_v53 = vpop.f32.mrb[5].mxu1 }
 0x1ea   :  { %944 = vmatmul.mubr.msk.f32.vlgmr.msra.gmra.mrb[6].mxu1 %vm473_vm2, %v925_v45 }
 0x1eb   :  { %979 = vmatpush3.bf16.msra.mxu1 %v976_v51  ;;  %950 = vmatprep.mubr.msk.f32.mxu1 %vm473_vm2, %v460_v53 }
 0x1f2   :  { %951 = vmatmul.mubr.msk.f32.vlgmr.msra.gmra.mrb[6].mxu1 %vm473_vm2, %v931_v52 }
 0x2c5   :  { %v952_v55 = vpop.f32.mrb[6].mxu1 }
 0x2c6   :  { %v727_v56 = vadd.f32 %v952_v55, %v847_v54  ;;  %v710_v57 = vpop.f32.mrb[7].mxu1 }
 0x2c7   :  { %v726_v58 = vadd.f32 %v847_v54, %v710_v57 }
 0x2c8   :  { %v729_v60 = vmax.f32 %v727_v56, 0.0 }
 0x2c9   :  { %v728_v59 = vmax.f32 %v726_v58, 0.0 }
 0x2cb   :  { %957 = vmatprep.mubr.msk.f32.mxu0 %vm473_vm2, %v728_v59 }
 0x2cc   :  { %958 = vmatmul.mubr.msk.f32.vlgmr.msra.gmra.mrb[4].mxu0 %vm473_vm2, %v729_v60 }
 0x39f   :  { %v959_v63 = vpop.f32.mrb[4].mxu0 }
 0x3a0   :  { %v812_v0 = vadd.f32 %v959_v63, %v733_v61  ;;  %v806_v1 = vpop.f32.mrb[5].mxu0 }
 0x3a1   :  { %v807_v2 = vadd.f32 %v806_v1, %v732_v62 }
 0x3a2   :  { %816 = vst.msk [vmem:[%s1125_s2 + $0x8] sm:$0xff] %vm473_vm2, %v812_v0 }
 0x3a3   :  { %815 = vst.msk [vmem:[%s1125_s2] sm:$0xff] %vm473_vm2, %v807_v2 }
 0x3a4   :  { %821 = vsyncpa [#allocation3], 1 }

</bundles_post_ra>
